<compile_context>
chip_gen: v6e
topology: v6e:2x2x1
jax: 0.10.0
libtpu: 0.0.40
codegen_flags: <defaults>
</compile_context>

<pallas_src>
import functools

import jax
import jax.numpy as jnp
from jax.experimental import pallas as pl
from jax.experimental.pallas import tpu as pltpu


# ----------------------------------------------------------------------------
# Pallas kernel: one grid step == one (zero-bordered, flattened, lane-padded)
# image.
# ----------------------------------------------------------------------------
def _dasi2_kernel(
    x_ref,        # (c_in, P_pad)    x, bf16
    xl_ref,       # (2*c_in, P_pad)  bilinear-upsampled x_low, bf16
    xe_ref,       # (c_in, P_pad)    x_high[:, :, ::2, ::2], f32 (tap/roll path)
    w_x_ref,      # (R, c_in) bf16   stacked x-path weights [xs | wp | wd | wi | fx]
    b_x_ref,      # (R, 1) f32
    w_l_ref,      # (c_out, 2*c_in) bf16   skips_2
    b_l_ref,      # (c_out, 1) f32
    w_t_ref,      # (c_out, 9*c_in) f32    skips_3 flattened (kh, kw, c)
    b_t_ref,      # (c_out, 1) f32
    w_fb_ref,     # (c_in, c_out) f32      folded tail/bn/fc
    o_ref,        # (c_in, P_pad) f32
    taps_ref,     # VMEM scratch (9*c_in, P_pad) f32
    *,
    c_in,
    c_out,
    pad_w,
):
    f32 = jnp.float32

    # ---- skips_3 tap stack: 9 lane-rolled copies of the decimated x_high ----
    # Roll wrap-around only ever lands on border / lane-padding pixels, which
    # the wrapper slices off; interior pixels never wrap.
    xe = xe_ref[...]
    k = 0
    for dh in (-1, 0, 1):
        for dw in (-1, 0, 1):
            shift = -(dh * pad_w + dw)
            tap = xe if shift == 0 else jnp.roll(xe, shift, axis=1)
            taps_ref[k * c_in:(k + 1) * c_in, :] = tap
            k += 1

    # ---- three independent MXU matmuls (no serial chain between them) ----
    # g rows: [xs | wp | wd | wi | fx]; bag/skip and tail/bn/fc folds were done
    # in the wrapper so everything here reads x directly.
    g = jnp.dot(w_x_ref[...], x_ref[...], preferred_element_type=f32) + b_x_ref[...]
    lo = jnp.dot(w_l_ref[...], xl_ref[...], preferred_element_type=f32) + b_l_ref[...]
    hi = jnp.dot(w_t_ref[...], taps_ref[...], preferred_element_type=f32) + b_t_ref[...]

    xs = g[0:c_out, :]
    wp = g[c_out:2 * c_out, :]
    wd = g[2 * c_out:3 * c_out, :]
    wi = g[3 * c_out:4 * c_out, :]
    fx = g[4 * c_out:4 * c_out + c_in, :]

    # Bag 3-way softmax (f32 on VPU/EUP) and combine.
    m = jnp.maximum(jnp.maximum(wp, wi), wd)
    ep = jnp.exp(wp - m)
    ei = jnp.exp(wi - m)
    ed = jnp.exp(wd - m)
    inv = pl.reciprocal(ep + ei + ed, approx=True)
    bag = (ep * lo + ei * hi + ed * xs) * inv

    # Folded tail_conv + residual + BatchNorm(eval) + fc, then ReLU.
    z = jnp.dot(w_fb_ref[...], bag, preferred_element_type=f32) + fx
    o_ref[...] = jnp.maximum(z, 0.0)


# ----------------------------------------------------------------------------
# JAX glue
# ----------------------------------------------------------------------------
def _interp_matrix(out_size, in_size):
    """1-D bilinear interpolation matrix (out, in), align_corners=True."""
    if in_size == 1:
        return jnp.ones((out_size, 1), jnp.float32)
    if out_size == 1:
        return jnp.zeros((1, in_size), jnp.float32).at[0, 0].set(1.0)
    src = jnp.arange(out_size, dtype=jnp.float32) * (in_size - 1) / (out_size - 1)
    lo = jnp.clip(jnp.floor(src).astype(jnp.int32), 0, in_size - 2)
    frac = src - lo.astype(jnp.float32)
    a = jnp.zeros((out_size, in_size), jnp.float32)
    a = a.at[jnp.arange(out_size), lo].set(1.0 - frac)
    a = a.at[jnp.arange(out_size), lo + 1].add(frac)
    return a


def dasi2_forward(params, x, x_low, x_high):
    """x: (N, c_in, H, W); x_low: (N, 2*c_in, Hl, Wl); x_high: (N, c_in, 2H, 2W).

    Implements the x_low-and-x_high (Bag) branch of DASI2.forward, NCHW in/out.
    """
    # TODO(synk): the x_low==None / x_high==None branches (which use self.conv
    # on concatenated chunks) and training-mode BatchNorm are not implemented.
    N, c_in, H, W = x.shape
    c_out = params["w_skips"].shape[0]
    assert c_out == 4 * c_in, "Bag requires out_features == 4 * in_features"
    assert x_high.shape == (N, c_in, 2 * H, 2 * W)
    assert x_low.shape[0] == N and x_low.shape[1] == 2 * c_in

    f32, bf16 = jnp.float32, jnp.bfloat16
    ph, pw = H + 2, W + 2
    P = ph * pw
    P_pad = ((P + 127) // 128) * 128      # lane-dense loads / stores

    # ---- pixel tensors: channels-first, zero border, flattened, lane-padded ----
    def pad_flat(t, dtype):
        n_, c_ = t.shape[0], t.shape[1]
        tp = jnp.pad(t, ((0, 0), (0, 0), (1, 1), (1, 1))).reshape(n_, c_, P)
        tp = jnp.pad(tp, ((0, 0), (0, 0), (0, P_pad - P)))
        return tp.astype(dtype)

    # skips_3 (3x3, stride 2, dilation 2, pad 2) only reads even-indexed pixels
    # of x_high, so it equals a 3x3/stride-1/pad-1 conv on the decimated image.
    xe_f = pad_flat(x_high[:, :, ::2, ::2], f32)           # (N, c_in, P_pad)
    x_f = pad_flat(x, bf16)                                # (N, c_in, P_pad)

    # Bilinear upsample of x_low (align_corners=True) directly into the padded
    # layout (border folded into the interp matrices); skips_2 (1x1 conv)
    # commutes with it and is applied inside the kernel.
    # TODO(synk): the pad/decimate copies above could be removed entirely with
    # in-kernel padding (row-wise DMA into a pre-zeroed VMEM scratch).
    Hl, Wl = x_low.shape[2], x_low.shape[3]
    a_h = jnp.zeros((ph, Hl), f32).at[1:1 + H, :].set(_interp_matrix(H, Hl))
    a_w = jnp.zeros((pw, Wl), f32).at[1:1 + W, :].set(_interp_matrix(W, Wl))
    xl_pad = jnp.einsum("oh,pw,nchw->ncop", a_h, a_w, x_low.astype(f32))
    xl_f = jnp.pad(xl_pad.reshape(N, 2 * c_in, P),
                   ((0, 0), (0, 0), (0, P_pad - P))).astype(bf16)

    # ---- weight folding (f32 math, then cast) ----
    w_skip = params["w_skips"].astype(f32)                 # (c_out, c_in)
    b_skip = params["b_skips"].astype(f32)
    w_sk2 = params["w_skips2"].astype(f32)                 # (c_out, 2*c_in)
    b_sk2 = params["b_skips2"].astype(f32)
    # (c_out, c_in, 3, 3) -> (c_out, kh, kw, c_in) -> (c_out, 9*c_in): matches
    # the kernel's tap-major (kh, kw, c) stacking.
    w_sk3 = jnp.transpose(params["w_sk3"].astype(f32), (0, 2, 3, 1)).reshape(
        c_out, 9 * c_in)
    b_sk3 = params["b_sk3"].astype(f32)

    # Bag weight_conv over all 4 chunks as one block-diagonal matrix, folded
    # with skips() so the softmax logits come straight from x.
    wb = params["w_bag"].astype(f32)                       # (3*c_in, c_in)
    bb = params["b_bag"].astype(f32)
    eye4 = jnp.eye(4, dtype=f32)
    w_bag_blk = jnp.concatenate(
        [jnp.kron(eye4, wb[0:c_in]),                       # p block
         jnp.kron(eye4, wb[c_in:2 * c_in]),                # d block
         jnp.kron(eye4, wb[2 * c_in:3 * c_in])], axis=0)   # i block  (3c_out, c_out)
    b_bag_blk = jnp.concatenate(
        [jnp.tile(bb[0:c_in], 4),
         jnp.tile(bb[c_in:2 * c_in], 4),
         jnp.tile(bb[2 * c_in:3 * c_in], 4)])              # (3*c_out,)
    w_bagskip = w_bag_blk @ w_skip                         # (3*c_out, c_in)
    b_bagskip = w_bag_blk @ b_skip + b_bag_blk

    # Fold tail_conv + residual + eval-mode BatchNorm + fc:
    #   relu(W_fc @ BN(W_tail @ bag + b_tail + xs)) = relu(W_fb@bag + W_fx@x + b_z)
    eps = 1e-5
    scale = params["bn_gamma"].astype(f32) * jax.lax.rsqrt(
        params["bn_var"].astype(f32) + eps)
    shift = params["bn_beta"].astype(f32) - params["bn_mean"].astype(f32) * scale
    w_fc = params["w_fc"].astype(f32)                      # (c_in, c_out)
    w_fcs = w_fc * scale[None, :]
    w_tail = params["w_tail"].astype(f32)
    b_tail = params["b_tail"].astype(f32)
    w_fb = w_fcs @ w_tail                                  # (c_in, c_out)
    w_fx = w_fcs @ w_skip                                  # (c_in, c_in)
    b_z = w_fcs @ (b_tail + b_skip) + w_fc @ shift         # (c_in,)

    # One stacked weight for everything computed from x: [xs | wp | wd | wi | fx].
    w_x_all = jnp.concatenate([w_skip, w_bagskip, w_fx], axis=0).astype(bf16)
    b_x_all = jnp.concatenate([b_skip, b_bagskip, b_z])[:, None]
    R = 4 * c_out + c_in

    w_l = w_sk2.astype(bf16)
    b_l = b_sk2[:, None]
    b_t = b_sk3[:, None]

    def px_spec(c):
        return pl.BlockSpec((None, c, P_pad), lambda n: (n, 0, 0))

    def const_spec(shape):
        zeros = (0,) * len(shape)
        return pl.BlockSpec(shape, lambda n, _z=zeros: _z)

    # Raise the scoped-VMEM limit only when the per-step footprint needs it
    # (large images); small inputs keep the default.
    # TODO(synk): for very large images on v7x (64 MiB physical VMEM) a
    # row-tiled grid axis with a +-1-row halo would be needed instead.
    in_bytes_per_lane = c_in * 2 + 2 * c_in * 2 + c_in * 4      # x, xl bf16; xe f32
    out_bytes_per_lane = c_in * 4
    per_step_bytes = P_pad * (
        2 * (in_bytes_per_lane + out_bytes_per_lane)            # double-buffered I/O
        + 9 * c_in * 4                                          # tap scratch
        + (R + 12 * c_out) * 4)                                 # matmul outs + softmax temps
    vmem_limit = None
    if per_step_bytes > (14 << 20):
        vmem_limit = int(min(2 * per_step_bytes, 96 << 20))

    out_flat = pl.pallas_call(
        functools.partial(_dasi2_kernel, c_in=c_in, c_out=c_out, pad_w=pw),
        out_shape=jax.ShapeDtypeStruct((N, c_in, P_pad), f32),
        grid=(N,),
        in_specs=[
            px_spec(c_in),                     # x
            px_spec(2 * c_in),                 # upsampled x_low
            px_spec(c_in),                     # decimated x_high
            const_spec((R, c_in)), const_spec((R, 1)),
            const_spec((c_out, 2 * c_in)), const_spec((c_out, 1)),
            const_spec((c_out, 9 * c_in)), const_spec((c_out, 1)),
            const_spec((c_in, c_out)),
        ],
        out_specs=px_spec(c_in),
        scratch_shapes=[pltpu.VMEM((9 * c_in, P_pad), f32)],
        compiler_params=pltpu.CompilerParams(
            dimension_semantics=("parallel",),
            vmem_limit_bytes=vmem_limit),
    )(x_f, xl_f, xe_f, w_x_all, b_x_all, w_l, b_l, w_sk3, b_t, w_fb)

    # Drop the lane padding and the 1-pixel border, restore NCHW.
    out = out_flat[:, :, :P].reshape(N, c_in, ph, pw)[:, :, 1:1 + H, 1:1 + W]
    return out


def init_params(key, c_in):
    """Parameters in PyTorch conv layouts (out, in[, kh, kw]) / (out,) biases."""
    c_out = 4 * c_in
    ks = jax.random.split(key, 11)
    w = lambda k, s: 0.1 * jax.random.normal(k, s, jnp.float32)
    return dict(
        w_skips=w(ks[0], (c_out, c_in)),        b_skips=w(ks[1], (c_out,)),
        w_skips2=w(ks[2], (c_out, 2 * c_in)),   b_skips2=w(ks[3], (c_out,)),
        w_sk3=w(ks[4], (c_out, c_in, 3, 3)),    b_sk3=w(ks[5], (c_out,)),
        w_bag=w(ks[6], (3 * c_in, c_in)),       b_bag=w(ks[7], (3 * c_in,)),
        w_tail=w(ks[8], (c_out, c_out)),        b_tail=w(ks[9], (c_out,)),
        w_fc=w(ks[10], (c_in, c_out)),
        bn_gamma=jnp.ones((c_out,), jnp.float32),
        bn_beta=jnp.zeros((c_out,), jnp.float32),
        bn_mean=jnp.zeros((c_out,), jnp.float32),
        bn_var=jnp.ones((c_out,), jnp.float32),
    )


if __name__ == "__main__":
    c_in = 4                     # Bag path requires out_features == 4 * in_features
    N, H, W = 2, 16, 16
    key = jax.random.PRNGKey(0)
    kx, kl, kh, kp = jax.random.split(key, 4)
    x = jax.random.normal(kx, (N, c_in, H, W), jnp.float32)
    x_low = jax.random.normal(kl, (N, 2 * c_in, H // 2, W // 2), jnp.float32)
    x_high = jax.random.normal(kh, (N, c_in, 2 * H, 2 * W), jnp.float32)
    params = init_params(kp, c_in)

    out = jax.jit(dasi2_forward)(params, x, x_low, x_high)
    jax.block_until_ready(out)
    assert out.shape == (N, c_in, H, W)
    assert bool(jnp.all(jnp.isfinite(out)))
    print("KERNEL_OK")
</pallas_src>

<mosaic_0001>
module attributes {stable_mosaic.version = 11 : i64} {
  func.func private @main(%arg0: i32) attributes {dimension_semantics = [#tpu.dimension_semantics<core_parallel>], iteration_bounds = array<i64: 2>, tpu.core_type = #tpu.core_type<sc_scalar_subcore>, window_params = []} {
    return
  }
}

module attributes {stable_mosaic.version = 11 : i64} {
  func.func private @main(%arg0: i32) attributes {dimension_semantics = [#tpu.dimension_semantics<core_parallel>], iteration_bounds = array<i64: 2>, tpu.core_type = #tpu.core_type<sc_scalar_subcore>, window_params = []} {
    return
  }
}

module attributes {stable_mosaic.version = 11 : i64} {
  func.func @_dasi2_kernel(%arg0: i32, %arg1: memref<1x4x384xbf16, #tpu.memory_space<vmem>>, %arg2: memref<1x8x384xbf16, #tpu.memory_space<vmem>>, %arg3: memref<1x4x384xf32, #tpu.memory_space<vmem>>, %arg4: memref<68x4xbf16, #tpu.memory_space<vmem>>, %arg5: memref<68x1xf32, #tpu.memory_space<vmem>>, %arg6: memref<16x8xbf16, #tpu.memory_space<vmem>>, %arg7: memref<16x1xf32, #tpu.memory_space<vmem>>, %arg8: memref<16x36xf32, #tpu.memory_space<vmem>>, %arg9: memref<16x1xf32, #tpu.memory_space<vmem>>, %arg10: memref<4x16xf32, #tpu.memory_space<vmem>>, %arg11: memref<1x4x384xf32, #tpu.memory_space<vmem>>, %arg12: memref<36x384xf32, #tpu.memory_space<vmem>>) attributes {dimension_semantics = [#tpu.dimension_semantics<parallel>], iteration_bounds = array<i64: 2>, scalar_prefetch = 0 : i64, scratch_operands = 1 : i64, tpu.core_type = #tpu.core_type<tc>, window_params = [{transform_indices = @transform_0, window_bounds = array<i64: 1, 4, 384>}, {transform_indices = @transform_1, window_bounds = array<i64: 1, 8, 384>}, {transform_indices = @transform_2, window_bounds = array<i64: 1, 4, 384>}, {pipeline_mode = #tpu.pipeline_mode<synchronous>, transform_indices = @transform_3, window_bounds = array<i64: 68, 4>}, {pipeline_mode = #tpu.pipeline_mode<synchronous>, transform_indices = @transform_4, window_bounds = array<i64: 68, 1>}, {pipeline_mode = #tpu.pipeline_mode<synchronous>, transform_indices = @transform_5, window_bounds = array<i64: 16, 8>}, {pipeline_mode = #tpu.pipeline_mode<synchronous>, transform_indices = @transform_6, window_bounds = array<i64: 16, 1>}, {pipeline_mode = #tpu.pipeline_mode<synchronous>, transform_indices = @transform_7, window_bounds = array<i64: 16, 36>}, {pipeline_mode = #tpu.pipeline_mode<synchronous>, transform_indices = @transform_8, window_bounds = array<i64: 16, 1>}, {pipeline_mode = #tpu.pipeline_mode<synchronous>, transform_indices = @transform_9, window_bounds = array<i64: 4, 16>}, {transform_indices = @transform_10, window_bounds = array<i64: 1, 4, 384>}]} {
    %c0 = arith.constant 0 : index
    %c0_0 = arith.constant 0 : index
    %c0_1 = arith.constant 0 : index
    %0 = vector.load %arg3[%c0, %c0_0, %c0_1] : memref<1x4x384xf32, #tpu.memory_space<vmem>>, vector<1x4x384xf32>
    %1 = vector.shape_cast %0 : vector<1x4x384xf32> to vector<4x384xf32>
    %2 = vector.extract_strided_slice %1 {offsets = [0, 365], sizes = [4, 19], strides = [1, 1]} : vector<4x384xf32> to vector<4x19xf32>
    %3 = vector.extract_strided_slice %1 {offsets = [0, 0], sizes = [4, 365], strides = [1, 1]} : vector<4x384xf32> to vector<4x365xf32>
    %4 = tpu.concatenate %2, %3 in 1 : vector<4x19xf32>, vector<4x365xf32> -> vector<4x384xf32>
    %c0_2 = arith.constant 0 : index
    %c0_3 = arith.constant 0 : index
    %5 = vector.load %arg12[%c0_2, %c0_3] : memref<36x384xf32, #tpu.memory_space<vmem>>, vector<4x384xf32>
    tpu.vector_store %arg12[%c0_2, %c0_3], %4 {strides = array<i32>} : memref<36x384xf32, #tpu.memory_space<vmem>>, vector<4x384xf32>,
    %6 = vector.extract_strided_slice %1 {offsets = [0, 366], sizes = [4, 18], strides = [1, 1]} : vector<4x384xf32> to vector<4x18xf32>
    %7 = vector.extract_strided_slice %1 {offsets = [0, 0], sizes = [4, 366], strides = [1, 1]} : vector<4x384xf32> to vector<4x366xf32>
    %8 = tpu.concatenate %6, %7 in 1 : vector<4x18xf32>, vector<4x366xf32> -> vector<4x384xf32>
    %c4 = arith.constant 4 : index
    %c0_4 = arith.constant 0 : index
    %9 = vector.load %arg12[%c4, %c0_4] : memref<36x384xf32, #tpu.memory_space<vmem>>, vector<4x384xf32>
    tpu.vector_store %arg12[%c4, %c0_4], %8 {strides = array<i32>} : memref<36x384xf32, #tpu.memory_space<vmem>>, vector<4x384xf32>,
    %10 = vector.extract_strided_slice %1 {offsets = [0, 367], sizes = [4, 17], strides = [1, 1]} : vector<4x384xf32> to vector<4x17xf32>
    %11 = vector.extract_strided_slice %1 {offsets = [0, 0], sizes = [4, 367], strides = [1, 1]} : vector<4x384xf32> to vector<4x367xf32>
    %12 = tpu.concatenate %10, %11 in 1 : vector<4x17xf32>, vector<4x367xf32> -> vector<4x384xf32>
    %c8 = arith.constant 8 : index
    %c0_5 = arith.constant 0 : index
    %13 = vector.load %arg12[%c8, %c0_5] : memref<36x384xf32, #tpu.memory_space<vmem>>, vector<4x384xf32>
    tpu.vector_store %arg12[%c8, %c0_5], %12 {strides = array<i32>} : memref<36x384xf32, #tpu.memory_space<vmem>>, vector<4x384xf32>,
    %14 = vector.extract_strided_slice %1 {offsets = [0, 383], sizes = [4, 1], strides = [1, 1]} : vector<4x384xf32> to vector<4x1xf32>
    %15 = vector.extract_strided_slice %1 {offsets = [0, 0], sizes = [4, 383], strides = [1, 1]} : vector<4x384xf32> to vector<4x383xf32>
    %16 = tpu.concatenate %14, %15 in 1 : vector<4x1xf32>, vector<4x383xf32> -> vector<4x384xf32>
    %c12 = arith.constant 12 : index
    %c0_6 = arith.constant 0 : index
    %17 = vector.load %arg12[%c12, %c0_6] : memref<36x384xf32, #tpu.memory_space<vmem>>, vector<4x384xf32>
    tpu.vector_store %arg12[%c12, %c0_6], %16 {strides = array<i32>} : memref<36x384xf32, #tpu.memory_space<vmem>>, vector<4x384xf32>,
    %c16 = arith.constant 16 : index
    %c0_7 = arith.constant 0 : index
    %18 = vector.load %arg12[%c16, %c0_7] : memref<36x384xf32, #tpu.memory_space<vmem>>, vector<4x384xf32>
    tpu.vector_store %arg12[%c16, %c0_7], %1 {strides = array<i32>} : memref<36x384xf32, #tpu.memory_space<vmem>>, vector<4x384xf32>,
    %19 = vector.extract_strided_slice %1 {offsets = [0, 1], sizes = [4, 383], strides = [1, 1]} : vector<4x384xf32> to vector<4x383xf32>
    %20 = vector.extract_strided_slice %1 {offsets = [0, 0], sizes = [4, 1], strides = [1, 1]} : vector<4x384xf32> to vector<4x1xf32>
    %21 = tpu.concatenate %19, %20 in 1 : vector<4x383xf32>, vector<4x1xf32> -> vector<4x384xf32>
    %c20 = arith.constant 20 : index
    %c0_8 = arith.constant 0 : index
    %22 = vector.load %arg12[%c20, %c0_8] : memref<36x384xf32, #tpu.memory_space<vmem>>, vector<4x384xf32>
    tpu.vector_store %arg12[%c20, %c0_8], %21 {strides = array<i32>} : memref<36x384xf32, #tpu.memory_space<vmem>>, vector<4x384xf32>,
    %23 = vector.extract_strided_slice %1 {offsets = [0, 17], sizes = [4, 367], strides = [1, 1]} : vector<4x384xf32> to vector<4x367xf32>
    %24 = vector.extract_strided_slice %1 {offsets = [0, 0], sizes = [4, 17], strides = [1, 1]} : vector<4x384xf32> to vector<4x17xf32>
    %25 = tpu.concatenate %23, %24 in 1 : vector<4x367xf32>, vector<4x17xf32> -> vector<4x384xf32>
    %c24 = arith.constant 24 : index
    %c0_9 = arith.constant 0 : index
    %26 = vector.load %arg12[%c24, %c0_9] : memref<36x384xf32, #tpu.memory_space<vmem>>, vector<4x384xf32>
    tpu.vector_store %arg12[%c24, %c0_9], %25 {strides = array<i32>} : memref<36x384xf32, #tpu.memory_space<vmem>>, vector<4x384xf32>,
    %27 = vector.extract_strided_slice %1 {offsets = [0, 18], sizes = [4, 366], strides = [1, 1]} : vector<4x384xf32> to vector<4x366xf32>
    %28 = vector.extract_strided_slice %1 {offsets = [0, 0], sizes = [4, 18], strides = [1, 1]} : vector<4x384xf32> to vector<4x18xf32>
    %29 = tpu.concatenate %27, %28 in 1 : vector<4x366xf32>, vector<4x18xf32> -> vector<4x384xf32>
    %c28 = arith.constant 28 : index
    %c0_10 = arith.constant 0 : index
    %30 = vector.load %arg12[%c28, %c0_10] : memref<36x384xf32, #tpu.memory_space<vmem>>, vector<4x384xf32>
    tpu.vector_store %arg12[%c28, %c0_10], %29 {strides = array<i32>} : memref<36x384xf32, #tpu.memory_space<vmem>>, vector<4x384xf32>,
    %31 = vector.extract_strided_slice %1 {offsets = [0, 19], sizes = [4, 365], strides = [1, 1]} : vector<4x384xf32> to vector<4x365xf32>
    %32 = vector.extract_strided_slice %1 {offsets = [0, 0], sizes = [4, 19], strides = [1, 1]} : vector<4x384xf32> to vector<4x19xf32>
    %33 = tpu.concatenate %31, %32 in 1 : vector<4x365xf32>, vector<4x19xf32> -> vector<4x384xf32>
    %c32 = arith.constant 32 : index
    %c0_11 = arith.constant 0 : index
    %34 = vector.load %arg12[%c32, %c0_11] : memref<36x384xf32, #tpu.memory_space<vmem>>, vector<4x384xf32>
    tpu.vector_store %arg12[%c32, %c0_11], %33 {strides = array<i32>} : memref<36x384xf32, #tpu.memory_space<vmem>>, vector<4x384xf32>,
    %c0_12 = arith.constant 0 : index
    %c0_13 = arith.constant 0 : index
    %35 = vector.load %arg4[%c0_12, %c0_13] : memref<68x4xbf16, #tpu.memory_space<vmem>>, vector<68x4xbf16>
    %c0_14 = arith.constant 0 : index
    %c0_15 = arith.constant 0 : index
    %c0_16 = arith.constant 0 : index
    %36 = vector.load %arg1[%c0_14, %c0_15, %c0_16] : memref<1x4x384xbf16, #tpu.memory_space<vmem>>, vector<1x4x384xbf16>
    %37 = vector.shape_cast %36 : vector<1x4x384xbf16> to vector<4x384xbf16>
    %cst = arith.constant dense<0.000000e+00> : vector<68x384xf32>
    %38 = tpu.matmul %35, %37, %cst {dimension_numbers = #tpu.dot_dimension_numbers<[1], [0], [0], [1], [0, 0, 1, 1], [], []>} : vector<68x4xbf16>, vector<4x384xbf16>, vector<68x384xf32> -> vector<68x384xf32>
    %c0_17 = arith.constant 0 : index
    %c0_18 = arith.constant 0 : index
    %39 = vector.load %arg5[%c0_17, %c0_18] : memref<68x1xf32, #tpu.memory_space<vmem>>, vector<68x1xf32>
    %40 = vector.broadcast %39 : vector<68x1xf32> to vector<68x384xf32>
    %41 = arith.addf %38, %40 : vector<68x384xf32>
    %c0_19 = arith.constant 0 : index
    %c0_20 = arith.constant 0 : index
    %42 = vector.load %arg6[%c0_19, %c0_20] : memref<16x8xbf16, #tpu.memory_space<vmem>>, vector<16x8xbf16>
    %c0_21 = arith.constant 0 : index
    %c0_22 = arith.constant 0 : index
    %c0_23 = arith.constant 0 : index
    %43 = vector.load %arg2[%c0_21, %c0_22, %c0_23] : memref<1x8x384xbf16, #tpu.memory_space<vmem>>, vector<1x8x384xbf16>
    %44 = vector.shape_cast %43 : vector<1x8x384xbf16> to vector<8x384xbf16>
    %cst_24 = arith.constant dense<0.000000e+00> : vector<16x384xf32>
    %45 = tpu.matmul %42, %44, %cst_24 {dimension_numbers = #tpu.dot_dimension_numbers<[1], [0], [0], [1], [0, 0, 1, 1], [], []>} : vector<16x8xbf16>, vector<8x384xbf16>, vector<16x384xf32> -> vector<16x384xf32>
    %c0_25 = arith.constant 0 : index
    %c0_26 = arith.constant 0 : index
    %46 = vector.load %arg7[%c0_25, %c0_26] : memref<16x1xf32, #tpu.memory_space<vmem>>, vector<16x1xf32>
    %47 = vector.broadcast %46 : vector<16x1xf32> to vector<16x384xf32>
    %48 = arith.addf %45, %47 : vector<16x384xf32>
    %c0_27 = arith.constant 0 : index
    %c0_28 = arith.constant 0 : index
    %49 = vector.load %arg8[%c0_27, %c0_28] : memref<16x36xf32, #tpu.memory_space<vmem>>, vector<16x36xf32>
    %c0_29 = arith.constant 0 : index
    %c0_30 = arith.constant 0 : index
    %50 = vector.load %arg12[%c0_29, %c0_30] : memref<36x384xf32, #tpu.memory_space<vmem>>, vector<36x384xf32>
    %cst_31 = arith.constant dense<0.000000e+00> : vector<16x384xf32>
    %51 = tpu.matmul %49, %50, %cst_31 {dimension_numbers = #tpu.dot_dimension_numbers<[1], [0], [0], [1], [0, 0, 1, 1], [], []>} : vector<16x36xf32>, vector<36x384xf32>, vector<16x384xf32> -> vector<16x384xf32>
    %c0_32 = arith.constant 0 : index
    %c0_33 = arith.constant 0 : index
    %52 = vector.load %arg9[%c0_32, %c0_33] : memref<16x1xf32, #tpu.memory_space<vmem>>, vector<16x1xf32>
    %53 = vector.broadcast %52 : vector<16x1xf32> to vector<16x384xf32>
    %54 = arith.addf %51, %53 : vector<16x384xf32>
    %55 = vector.extract_strided_slice %41 {offsets = [0, 0], sizes = [16, 384], strides = [1, 1]} : vector<68x384xf32> to vector<16x384xf32>
    %56 = vector.extract_strided_slice %41 {offsets = [16, 0], sizes = [16, 384], strides = [1, 1]} : vector<68x384xf32> to vector<16x384xf32>
    %57 = vector.extract_strided_slice %41 {offsets = [32, 0], sizes = [16, 384], strides = [1, 1]} : vector<68x384xf32> to vector<16x384xf32>
    %58 = vector.extract_strided_slice %41 {offsets = [48, 0], sizes = [16, 384], strides = [1, 1]} : vector<68x384xf32> to vector<16x384xf32>
    %59 = vector.extract_strided_slice %41 {offsets = [64, 0], sizes = [4, 384], strides = [1, 1]} : vector<68x384xf32> to vector<4x384xf32>
    %60 = arith.maximumf %56, %58 : vector<16x384xf32>
    %61 = arith.maximumf %60, %57 : vector<16x384xf32>
    %62 = arith.subf %56, %61 : vector<16x384xf32>
    %63 = math.exp %62 : vector<16x384xf32>
    %64 = arith.subf %58, %61 : vector<16x384xf32>
    %65 = math.exp %64 : vector<16x384xf32>
    %66 = arith.subf %57, %61 : vector<16x384xf32>
    %67 = math.exp %66 : vector<16x384xf32>
    %68 = arith.addf %63, %65 : vector<16x384xf32>
    %69 = arith.addf %68, %67 : vector<16x384xf32>
    %70 = tpu.reciprocal %69 {approx = true} : vector<16x384xf32> -> vector<16x384xf32>
    %71 = arith.mulf %63, %48 : vector<16x384xf32>
    %72 = arith.mulf %65, %54 : vector<16x384xf32>
    %73 = arith.addf %71, %72 : vector<16x384xf32>
    %74 = arith.mulf %67, %55 : vector<16x384xf32>
    %75 = arith.addf %73, %74 : vector<16x384xf32>
    %76 = arith.mulf %75, %70 : vector<16x384xf32>
    %c0_34 = arith.constant 0 : index
    %c0_35 = arith.constant 0 : index
    %77 = vector.load %arg10[%c0_34, %c0_35] : memref<4x16xf32, #tpu.memory_space<vmem>>, vector<4x16xf32>
    %cst_36 = arith.constant dense<0.000000e+00> : vector<4x384xf32>
    %78 = tpu.matmul %77, %76, %cst_36 {dimension_numbers = #tpu.dot_dimension_numbers<[1], [0], [0], [1], [0, 0, 1, 1], [], []>} : vector<4x16xf32>, vector<16x384xf32>, vector<4x384xf32> -> vector<4x384xf32>
    %79 = arith.addf %78, %59 : vector<4x384xf32>
    %cst_37 = arith.constant 0.000000e+00 : f32
    %80 = vector.broadcast %cst_37 : f32 to vector<4x384xf32>
    %81 = arith.maximumf %79, %80 : vector<4x384xf32>
    %c0_38 = arith.constant 0 : index
    %c0_39 = arith.constant 0 : index
    %c0_40 = arith.constant 0 : index
    %82 = vector.load %arg11[%c0_38, %c0_39, %c0_40] : memref<1x4x384xf32, #tpu.memory_space<vmem>>, vector<1x4x384xf32>
    %83 = vector.shape_cast %82 : vector<1x4x384xf32> to vector<4x384xf32>
    %84 = vector.shape_cast %81 : vector<4x384xf32> to vector<1x4x384xf32>
    tpu.vector_store %arg11[%c0_38, %c0_39, %c0_40], %84 {strides = array<i32>} : memref<1x4x384xf32, #tpu.memory_space<vmem>>, vector<1x4x384xf32>,
    return
  }
  func.func @transform_0(%arg0: i32) -> (i32, i32, i32) {
    %c0_i32 = arith.constant 0 : i32
    %c0_i32_0 = arith.constant 0 : i32
    %c0_i32_1 = arith.constant 0 : i32
    return %arg0, %c0_i32, %c0_i32_0 : i32, i32, i32
  }
  func.func @transform_1(%arg0: i32) -> (i32, i32, i32) {
    %c0_i32 = arith.constant 0 : i32
    %c0_i32_0 = arith.constant 0 : i32
    %c0_i32_1 = arith.constant 0 : i32
    return %arg0, %c0_i32, %c0_i32_0 : i32, i32, i32
  }
  func.func @transform_2(%arg0: i32) -> (i32, i32, i32) {
    %c0_i32 = arith.constant 0 : i32
    %c0_i32_0 = arith.constant 0 : i32
    %c0_i32_1 = arith.constant 0 : i32
    return %arg0, %c0_i32, %c0_i32_0 : i32, i32, i32
  }
  func.func @transform_3(%arg0: i32) -> (i32, i32) {
    %c0_i32 = arith.constant 0 : i32
    %c0_i32_0 = arith.constant 0 : i32
    %c0_i32_1 = arith.constant 0 : i32
    return %c0_i32, %c0_i32_0 : i32, i32
  }
  func.func @transform_4(%arg0: i32) -> (i32, i32) {
    %c0_i32 = arith.constant 0 : i32
    %c0_i32_0 = arith.constant 0 : i32
    %c0_i32_1 = arith.constant 0 : i32
    return %c0_i32, %c0_i32_0 : i32, i32
  }
  func.func @transform_5(%arg0: i32) -> (i32, i32) {
    %c0_i32 = arith.constant 0 : i32
    %c0_i32_0 = arith.constant 0 : i32
    %c0_i32_1 = arith.constant 0 : i32
    return %c0_i32, %c0_i32_0 : i32, i32
  }
  func.func @transform_6(%arg0: i32) -> (i32, i32) {
    %c0_i32 = arith.constant 0 : i32
    %c0_i32_0 = arith.constant 0 : i32
    %c0_i32_1 = arith.constant 0 : i32
    return %c0_i32, %c0_i32_0 : i32, i32
  }
  func.func @transform_7(%arg0: i32) -> (i32, i32) {
    %c0_i32 = arith.constant 0 : i32
    %c0_i32_0 = arith.constant 0 : i32
    %c0_i32_1 = arith.constant 0 : i32
    return %c0_i32, %c0_i32_0 : i32, i32
  }
  func.func @transform_8(%arg0: i32) -> (i32, i32) {
    %c0_i32 = arith.constant 0 : i32
    %c0_i32_0 = arith.constant 0 : i32
    %c0_i32_1 = arith.constant 0 : i32
    return %c0_i32, %c0_i32_0 : i32, i32
  }
  func.func @transform_9(%arg0: i32) -> (i32, i32) {
    %c0_i32 = arith.constant 0 : i32
    %c0_i32_0 = arith.constant 0 : i32
    %c0_i32_1 = arith.constant 0 : i32
    return %c0_i32, %c0_i32_0 : i32, i32
  }
  func.func @transform_10(%arg0: i32) -> (i32, i32, i32) {
    %c0_i32 = arith.constant 0 : i32
    %c0_i32_0 = arith.constant 0 : i32
    %c0_i32_1 = arith.constant 0 : i32
    return %arg0, %c0_i32, %c0_i32_0 : i32, i32, i32
  }
}

</mosaic_0001>

<bundles_post_ra>
// kernel: tile.28
= control target key start
LH: loop header
LB: loop body
LE: loop exit
PB: predicated region body
PF: predicated region fallthrough
CT: control target
= control target key end

     0   :  { %s22_s0 = inlined_call_operand.vmem [shape: f32[4], index: 0, kind: input, shape index: {}]   ;;  %s23_s1 = inlined_call_operand.vmem [shape: f32[4,4], index: 1, kind: output, shape index: {}]  }
   0x1   :  { %v4_v0 = vld [vmem:[%s22_s0] ss:$0 sm:$0xff] }
   0x2   :  { %5 = vst [vmem:[%s23_s1] sm:$0xf] %v4_v0 }

// kernel: tile.29
= control target key start
LH: loop header
LB: loop body
LE: loop exit
PB: predicated region body
PF: predicated region fallthrough
CT: control target
= control target key end

     0   :  { %vm8_vm0 = vcmask 31744   ;;  %s40_s8 = smov 4   ;;  %s41_s9 = smov 8   ;;  %vm14_vm1 = vcmask 130144   ;;  %vm20_vm2 = vcmask 97344   ;;  %vm26_vm3 = vcmask 64544   ;;  %s58_s0 = inlined_call_operand.vmem [shape: f32[4,4], index: 0, kind: input, shape index: {}]   ;;  %s59_s1 = inlined_call_operand.vmem [shape: f32[16], index: 1, kind: output, shape index: {}]  }
   0x1   :  { %v5_v0 = vld [vmem:[%s58_s0] sm:$0xf]  ;;  %s39_s0 = smov 12  }
   0x2   :  { %6 = vst [vmem:[#allocation1] sm:$0xf] %v5_v0 }
   0x9   :  { %v11_v1 = vld [vmem:[#allocation1 + $0x3] sm:$0x1]   ;;  %v23_v2 = vld [vmem:[#allocation1 + $0x1] sm:$0x1]   ;;  %v7_v3 = vld [vmem:[#allocation1] sm:$0x1]  }
   0xa   :  { %12 = vrot.lane.b32.xlu0 %v11_v1, %s39_s0  ;;  %24 = vrot.lane.b32.xlu1 %v23_v2, %s40_s8  ;;  %v17_v4 = vld [vmem:[#allocation1 + $0x2] sm:$0x1]   ;;  %9 = vst.msk [vmem:[#allocation0] sm:$0x1] %vm8_vm0, %v7_v3  }
   0xe   :  { %18 = vrot.lane.b32.xlu0 %v17_v4, %s41_s9 }
  0x7c   :  { %v13_v5 = vpop.permute.xlu0 %12   ;;  %v25_v6 = vpop.permute.xlu1 %24  }
  0x7d   :  { %15 = vst.msk [vmem:[#allocation0] sm:$0x1] %vm14_vm1, %v13_v5  }
  0x80   :  { %v19_v7 = vpop.permute.xlu0 %18  }
  0x81   :  { %21 = vst.msk [vmem:[#allocation0] sm:$0x1] %vm20_vm2, %v19_v7  }
  0x82   :  { %27 = vst.msk [vmem:[#allocation0] sm:$0x1] %vm26_vm3, %v25_v6  }
  0x89   :  { %v32_v8 = vld [vmem:[#allocation0] sm:$0x1] }
  0x8a   :  { %35 = vst [vmem:[%s59_s1] sm:$0x1] %v32_v8 }

// kernel: dasi2_forward.1
= control target key start
LH: loop header
LB: loop body
LE: loop exit
PB: predicated region body
PF: predicated region fallthrough
CT: control target
= control target key end

     0   :  { %s1794_s13 = smov 0   ;;  %s2106_s0 = inlined_call_operand.vmem [shape: bf16[2,4,384], index: 0, kind: input, shape index: {}]   ;;  %s2107_s1 = inlined_call_operand.vmem [shape: bf16[2,8,384], index: 1, kind: input, shape index: {}]   ;;  %s2108_s2 = inlined_call_operand.vmem [shape: f32[2,4,384], index: 2, kind: input, shape index: {}]   ;;  %s2109_s3 = inlined_call_operand.vmem [shape: bf16[68,4], index: 3, kind: input, shape index: {}]   ;;  %s2110_s4 = inlined_call_operand.vmem [shape: f32[68,1], index: 4, kind: input, shape index: {}]   ;;  %s2111_s5 = inlined_call_operand.vmem [shape: bf16[16,8], index: 5, kind: input, shape index: {}]   ;;  %s2112_s6 = inlined_call_operand.vmem [shape: f32[16,1], index: 6, kind: input, shape index: {}]   ;;  %s2113_s7 = inlined_call_operand.vmem [shape: f32[16,36], index: 7, kind: input, shape index: {}]   ;;  %s2114_s8 = inlined_call_operand.vmem [shape: f32[16,1], index: 8, kind: input, shape index: {}]   ;;  %s2115_s9 = inlined_call_operand.vmem [shape: f32[4,16], index: 9, kind: input, shape index: {}]   ;;  %s2116_s10 = inlined_call_operand.vmem [shape: f32[2,4,384], index: 10, kind: output, shape index: {}]  }
   0x1 LB: > { %s1527_s14 = sadd.s32 4294967295, %s1725_s13   ;;  %p1531_p0 = scmp.ge.s32.totalorder %s1725_s13, 1  ;;  %s1725_s13 = sphi %s1794_s13, %s20_s13  }
   0x2   : > { %p332_p1 = scmp.lt.s32.totalorder %s1725_s13, 3 }
   0x4   : > { %p333_p2 = pnand %p1531_p0, %p332_p1 }
   0x5   : > { %p380_p3 = scmp.lt.s32.totalorder (!%p333_p2), %s1527_s14, 1  ;;  %s1731_s23 = smov (!%p333_p2), 109  }
   0x6   : > { %336 = sbr.rel (%p333_p2) target bundleno = 601 (0x259), region = 60  ;;  %s1732_s24 = smov (!%p333_p2), 110  }
   0x7   : > { %s1733_s30 = smov (!%p333_p2), 127   ;;  %s1738_s25 = smov (!%p333_p2), 19  }
   0xb   : > { %v658_v0 = vlaneseq  ;;  %v1727_v1 = vmov 1983009808   ;;  %v1728_v3 = vmov 0   ;;  %s2118_s14 = smov (!%p380_p3, %s1527_s14), 1  ;;  %v1729_v6 = vmov 0.0   ;;  %v1661_v19 = vld [vmem:[%s2109_s3] sm:$0xff]  }
   0xc   : > { %v656_v2 = vunpack.c.l.s4 %v1727_v1  ;;  %728 = vmatprep.mubr.bf16.mxu0 %v1728_v3  ;;  %1659 = vset.pattern.permute.xlu1 %v1728_v3  ;;  %vm1730_vm0 = vmmov 0   ;;  %s1808_s15 = smul.u32 12, %s2118_s14  ;;  %vm686_vm1 = vcmask 1041408   ;;  %vm670_vm2 = vcmask 31744   ;;  %v1663_v25 = vld [vmem:[%s2109_s3 + $0x8] sm:$0xff]   ;;  %v1664_v26 = vld [vmem:[%s2109_s3 + $0x10] sm:$0xff]  }
   0xd   : > { %v659_v4 = vshrl.u32 %v658_v0, 7  ;;  %1658 = vset.pattern.permute.xlu0 %v1728_v3  ;;  %1588 = vmatprep.subr.bf16.mxu1 %v1729_v6  ;;  %s1636_s19 = smul.u32 6, %s2118_s14  ;;  %vm882_vm3 = vcmask 1043456   ;;  %s1734_s14 = smov 111   ;;  %v1665_v27 = vld [vmem:[%s2109_s3 + $0x18] sm:$0xff]   ;;  %v1670_v31 = vld [vmem:[%s2111_s5] sm:$0xff]  }
   0xe   : > { %v657_v5 = vunpack.c.0.s8 %v656_v2  ;;  %1590 = vmatprep.mubr.msk.bf16.mxu1 %vm1730_vm0, %v1729_v6  ;;  %s394_s18 = scalar_lea.vmem %s2108_s2, %s1808_s15  ;;  %s389_s22 = scalar_lea.vmem %s2107_s1, %s1808_s15  ;;  %v1666_v28 = vld [vmem:[%s2109_s3 + $0x20] ss:$0 sps:$4 sm:$0x33]   ;;  %v583_v29 = vld [vmem:[%s2110_s4 + $0x38] sm:$0xff]  ;;  %vm878_vm4 = vcmask 64512   ;;  %vm1005_vm5 = vcmask 293888  }
   0xf   : > { %v1814_v8 = vld [vmem:[%s394_s18 + $0x8] sm:$0xf]  ;;  %v1816_v9 = vld [vmem:[%s394_s18] sm:$0xff]  ;;  %s384_s27 = scalar_lea.vmem %s2106_s0, %s1636_s19  ;;  %s1735_s18 = smov 1   ;;  %v579_v30 = vld [vmem:[%s2110_s4 + $0x18] sm:$0xff]  ;;  %vm555_vm6 = vcmask 891904  }
  0x10   : > { %v660_v7 = vsub.s32 %v657_v5, %v659_v4  ;;  %553 = vrot.lane.b32.xlu1 %v1814_v8, %s1731_s23  ;;  %485 = vst [vmem:[#allocation2 + $0x8] sm:$0xf] %v1816_v9  ;;  %487 = vst [vmem:[#allocation2 + $0x40] sm:$0xf] %v1814_v8  ;;  %531 = vrot.lane.b32.xlu0 %v1814_v8, %s1732_s24  ;;  %v1828_v10 = vcombine.high %v1816_v9, %v1816_v9  ;;  %v575_v11 = vld [vmem:[%s384_s27] sm:$0x3f]  ;;  %s399_s26 = scalar_lea.vmem %s2116_s10, %s1808_s15 }
  0x11   : > { %v654_v13 = vcombine.high %v575_v11, %v575_v11  ;;  %v851_v14 = vld [vmem:[%s389_s22] sm:$0xff]  ;;  %v1669_v22 = vld [vmem:[%s389_s22 + $0x8] ss:$0 sps:$4 sm:$0xff]   ;;  %s1736_s19 = smov 18   ;;  %s1737_s22 = smov 17   ;;  %v578_v33 = vld [vmem:[%s2110_s4 + $0x10] sm:$0xff] }
  0x12   : > { %486 = vst [vmem:[#allocation2 + $0x48] sm:$0xf] %v1828_v10  ;;  %v661_v12 = vrot.slane %v575_v11, %v660_v7  ;;  %v1554_v18 = vcombine.high %v851_v14, %v851_v14  ;;  %v1553_v21 = vcombine.low %v851_v14, %v851_v14  ;;  %v890_v24 = vsel %vm882_vm3, %v1669_v22, 0  ;;  %v1912_v32 = vld [vmem:[%s2113_s7] sm:$0xff]  ;;  %v581_v34 = vld [vmem:[%s2110_s4 + $0x28] sm:$0xff]  ;;  %v582_v35 = vld [vmem:[%s2110_s4 + $0x30] sm:$0xff] }
  0x13   : > { %v668_v17 = vrot.slane %v654_v13, %v660_v7  ;;  %v580_v36 = vld [vmem:[%s2110_s4 + $0x20] sm:$0xff]  ;;  %v994_v37 = vld [vmem:[%s2114_s8 + $0x8] sm:$0xff]  ;;  %vm533_vm7 = vcmask 900096   ;;  %vm494_vm8 = vcmask 1039360   ;;  %vm516_vm9 = vcmask 908288  }
  0x14   : > { %549 = vrot.lane.b32.xlu1 %v1816_v9, %s1731_s23  ;;  %527 = vrot.lane.b32.xlu0 %v1816_v9, %s1732_s24  ;;  %v669_v15 = vcombine.high %v661_v12, %v661_v12  ;;  %v688_v16 = vsel %vm686_vm1, %v661_v12, 0  ;;  %v884_v23 = vsel %vm882_vm3, %v1553_v21, 0  ;;  %v854_v38 = vld [vmem:[%s2112_s6 + $0x8] sm:$0xff]  ;;  %v853_v39 = vld [vmem:[%s2112_s6] sm:$0xff]  ;;  %vm469_vm10 = vcmask 7168  }
  0x15   : > { %v694_v20 = vsel %vm686_vm1, %v668_v17, 0  ;;  %v577_v40 = vld [vmem:[%s2110_s4 + $0x8] sm:$0xff]  ;;  %v576_v41 = vld [vmem:[%s2110_s4] sm:$0xff]  ;;  %vm430_vm11 = vcmask 146432   ;;  %vm452_vm12 = vcmask 138240   ;;  %vm413_vm13 = vcmask 154624  }
  0x16   : > { %1541 = vmatprep.subr.msk.bf16.mxu0 %vm686_vm1, %v669_v15  ;;  %1589 = vmatpush3.bf16.msra.mxu1 %v694_v20  ;;  %v993_v42 = vld [vmem:[%s2114_s8] sm:$0xff]  ;;  %vm1294_vm14 = vcmask 130048  }
  0x17   : > { %711 = vmatpush1.bf16.msra.mxu0 %v688_v16  ;;  %1610 = vmatprep.subr.bf16.mxu1 %v1729_v6  ;;  %v584_v43 = vld [vmem:[%s2110_s4 + $0x40] sm:$0xf] }
  0x18   : > { %551 = vrot.lane.b32.xlu1 %v1828_v10, %s1731_s23  ;;  %529 = vrot.lane.b32.xlu0 %v1828_v10, %s1732_s24 }
  0x19   : > { %1556 = vmatprep.subr.msk.bf16.mxu0 %vm882_vm3, %v1554_v18  ;;  %1591 = vmatmul.mubr.msk.bf16.vlgmr.msra.gmra.mxu1 %vm670_vm2, %v1661_v19 }
  0x1a   : > { %1542 = vmatmul.mubr.msk.bf16.vlgmr.msra.gmra.mxu0 %vm670_vm2, %v1661_v19  ;;  %1594 = vmatprep.mubr.msk.bf16.mxu1 %vm1730_vm0, %v1729_v6 }
  0x1b   : > { %738 = vmatprep.mubr.bf16.mxu0 %v1728_v3  ;;  %907 = vmatpush1.bf16.msra.mxu0 %v884_v23 }
  0x1c   : > { %492 = vrot.lane.b32.xlu1 %v1814_v8, %s1733_s30  ;;  %490 = vrot.lane.b32.xlu0 %v1828_v10, %s1733_s30 }
  0x1d   : > { %1611 = vmatpush3.bf16.msra.mxu1 %v890_v24 }
  0x20   : > { %514 = vrot.lane.b32.xlu1 %v1814_v8, %s1734_s14  ;;  %512 = vrot.lane.b32.xlu0 %v1828_v10, %s1734_s14 }
  0x21   : > { %1595 = vmatmul.mubr.msk.bf16.gmra.mxu1 %vm670_vm2, %v1663_v25 }
  0x22   : > { %1543 = vmatmul.mubr.msk.bf16.gmra.mxu0 %vm670_vm2, %v1663_v25  ;;  %1598 = vmatprep.mubr.msk.bf16.mxu1 %vm1730_vm0, %v1729_v6 }
  0x23   : > { %748 = vmatprep.mubr.bf16.mxu0 %v1728_v3 }
  0x24   : > { %510 = vrot.lane.b32.xlu1 %v1816_v9, %s1734_s14  ;;  %488 = vrot.lane.b32.xlu0 %v1816_v9, %s1733_s30 }
  0x28   : > { %467 = vrot.lane.b32.xlu1 %v1828_v10, %s1735_s18  ;;  %465 = vrot.lane.b32.xlu0 %v1816_v9, %s1735_s18 }
  0x29   : > { %1599 = vmatmul.mubr.msk.bf16.gmra.mxu1 %vm670_vm2, %v1664_v26 }
  0x2a   : > { %1544 = vmatmul.mubr.msk.bf16.gmra.mxu0 %vm670_vm2, %v1664_v26  ;;  %1602 = vmatprep.mubr.msk.bf16.mxu1 %vm1730_vm0, %v1729_v6 }
  0x2b   : > { %758 = vmatprep.mubr.bf16.mxu0 %v1728_v3 }
  0x2c   : > { %426 = vrot.lane.b32.xlu1 %v1816_v9, %s1736_s19  ;;  %462 = vrot.lane.b32.xlu0 %v1814_v8, %s1735_s18 }
  0x30   : > { %448 = vrot.lane.b32.xlu1 %v1816_v9, %s1737_s22  ;;  %428 = vrot.lane.b32.xlu0 %v1828_v10, %s1736_s19 }
  0x31   : > { %1603 = vmatmul.mubr.msk.bf16.gmra.mxu1 %vm670_vm2, %v1665_v27 }
  0x32   : > { %1545 = vmatmul.mubr.msk.bf16.gmra.mxu0 %vm670_vm2, %v1665_v27  ;;  %1606 = vmatprep.mubr.msk.bf16.mxu1 %vm1730_vm0, %v1729_v6 }
  0x33   : > { %768 = vmatprep.mubr.bf16.mxu0 %v1728_v3 }
  0x34   : > { %423 = vrot.lane.b32.xlu1 %v1814_v8, %s1736_s19  ;;  %450 = vrot.lane.b32.xlu0 %v1828_v10, %s1737_s22 }
  0x38   : > { %409 = vrot.lane.b32.xlu1 %v1816_v9, %s1738_s25  ;;  %445 = vrot.lane.b32.xlu0 %v1814_v8, %s1737_s22 }
  0x39   : > { %1607 = vmatmul.mubr.msk.bf16.gmra.mxu1 %vm670_vm2, %v1666_v28 }
  0x3a   : > { %1546 = vmatmul.mubr.msk.bf16.gmra.mxu0 %vm670_vm2, %v1666_v28  ;;  %1612 = vmatprep.mubr.msk.bf16.mxu1 %vm1730_vm0, %v1729_v6 }
  0x3b   : > { %924 = vmatprep.mubr.bf16.mxu0 %v1728_v3 }
  0x3c   : > { %404 = vrot.lane.b32.xlu1 %v1814_v8, %s1738_s25  ;;  %411 = vrot.lane.b32.xlu0 %v1828_v10, %s1738_s25 }
  0x40   : > { %622 = vperm.xlu1 %1659, %v583_v29   ;;  %602 = vperm.xlu0 %1658, %v579_v30  }
  0x41   : > { %1613 = vmatmul.mubr.msk.bf16.vlgmr.msra.gmra.mxu1 %vm878_vm4, %v1670_v31 }
  0x42   : > { %1557 = vmatmul.mubr.msk.bf16.vlgmr.msra.gmra.mxu0 %vm878_vm4, %v1670_v31  ;;  %1626 = vmatprep.mubr.msk.f32.mxu1 %vm1005_vm5, %v1912_v32 }
  0x43   : > { %1085 = vmatprep.mubr.f32.mxu0 %v1729_v6 }
  0x44   : > { %597 = vperm.xlu1 %1659, %v578_v33   ;;  %612 = vperm.xlu0 %1658, %v581_v34  }
  0x48   : > { %617 = vperm.xlu1 %1659, %v582_v35   ;;  %607 = vperm.xlu0 %1658, %v580_v36  }
  0x4c   : > { %1002 = vperm.xlu0 %1658, %v994_v37   ;;  %862 = vperm.xlu1 %1659, %v854_v38  }
  0x50   : > { %857 = vperm.xlu0 %1658, %v853_v39   ;;  %592 = vperm.xlu1 %1659, %v577_v40  }
  0x54   : > { %587 = vperm.xlu0 %1658, %v576_v41   ;;  %997 = vperm.xlu1 %1659, %v993_v42  }
  0x58   : > { %627 = vperm.xlu1 %1659, %v584_v43  }
  0x82   : > { %v554_v44 = vpop.permute.xlu1 %553  ;;  %v532_v45 = vpop.permute.xlu0 %531 }
  0x86   : > { %v550_v46 = vpop.permute.xlu1 %549  ;;  %v528_v47 = vpop.permute.xlu0 %527 }
  0x87   : > { %v562_v48 = vsel %vm555_vm6, %v554_v44, %v550_v46  ;;  %v538_v49 = vsel %vm533_vm7, %v532_v45, %v528_v47 }
  0x88   : > { %565 = vst [vmem:[#allocation2 + $0x28] sm:$0xf] %v562_v48  ;;  %v542_v50 = vrot.slane %v538_v49, 4 }
  0x8a   : > { %548 = vst [vmem:[#allocation2 + $0x38] sm:$0xf0] %v542_v50  ;;  %v552_v51 = vpop.permute.xlu1 %551  ;;  %v530_v52 = vpop.permute.xlu0 %529 }
  0x8b   : > { %v556_v53 = vsel %vm555_vm6, %v550_v46, %v552_v51  ;;  %v557_v54 = vsel %vm555_vm6, %v552_v51, %v554_v44  ;;  %v534_v55 = vsel %vm533_vm7, %v528_v47, %v530_v52  ;;  %v535_v56 = vsel %vm533_vm7, %v530_v52, %v532_v45 }
  0x8c   : > { %563 = vst [vmem:[#allocation2 + $0x60] sm:$0xf] %v556_v53  ;;  %564 = vst [vmem:[#allocation2 + $0x70] sm:$0xf] %v557_v54  ;;  %v540_v57 = vrot.slane %v534_v55, 4  ;;  %v541_v58 = vrot.slane %v535_v56, 4 }
  0x8d   : > { %v977_v54 = vld [vmem:[%s2113_s7 + $0x8] sm:$0xff] }
  0x8e   : > { %546 = vst [vmem:[#allocation2 + $0x20] sm:$0xf0] %v540_v57  ;;  %547 = vst [vmem:[#allocation2 + $0x10] sm:$0xf0] %v541_v58  ;;  %v493_v59 = vpop.permute.xlu1 %492  ;;  %v491_v60 = vpop.permute.xlu0 %490 }
  0x8f   : > { %v496_v61 = vsel %vm494_vm8, %v491_v60, %v493_v59  ;;  %v992_v62 = vld [vmem:[#allocation2 + $0x28] sm:$0xf] }
  0x90   : > { %v502_v63 = vrot.slane %v496_v61, 4  ;;  %1616 = vmatprep.subr.msk.mxu1 %vm882_vm3, %v992_v62 }
  0x91   : > { %1617 = vmatpush3.msk.msra.mxu1 %vm882_vm3, %v992_v62 }
  0x92   : > { %508 = vst [vmem:[#allocation2 + $0x48] sm:$0xf0] %v502_v63  ;;  %v515_v0 = vpop.permute.xlu1 %514  ;;  %v513_v1 = vpop.permute.xlu0 %512 }
  0x93   : > { %v518_v2 = vsel %vm516_vm9, %v513_v1, %v515_v0  ;;  %v991_v3 = vld [vmem:[#allocation2 + $0x70] sm:$0xf]  ;;  %v990_v4 = vld [vmem:[#allocation2 + $0x60] sm:$0xf] }
  0x94   : > { %525 = vst [vmem:[#allocation2 + $0x10] sm:$0xf] %v518_v2  ;;  %1559 = vmatprep.subr.msk.mxu0 %vm882_vm3, %v991_v3 }
  0x95   : > { %1560 = vmatpush1.msk.msra.mxu0 %vm882_vm3, %v990_v4 }
  0x96   : > { %v511_v5 = vpop.permute.xlu1 %510  ;;  %v489_v7 = vpop.permute.xlu0 %488 }
  0x97   : > { %v517_v8 = vsel %vm516_vm9, %v511_v5, %v513_v1  ;;  %v523_v9 = vsel %vm516_vm9, %v515_v0, %v511_v5  ;;  %v495_v10 = vsel %vm494_vm8, %v489_v7, %v491_v60  ;;  %v499_v11 = vsel %vm494_vm8, %v493_v59, %v489_v7 }
  0x98   : > { %524 = vst [vmem:[#allocation2 + $0x20] sm:$0xf] %v517_v8  ;;  %526 = vst [vmem:[#allocation2 + $0x38] sm:$0xf] %v523_v9  ;;  %v501_v12 = vrot.slane %v495_v10, 4  ;;  %v503_v13 = vrot.slane %v499_v11, 4 }
  0x99   : > { %v985_v27 = vld [vmem:[#allocation2 + $0x48] sm:$0xff] }
  0x9a   : > { %507 = vst [vmem:[#allocation2 + $0x8] sm:$0xf0] %v501_v12  ;;  %509 = vst [vmem:[#allocation2 + $0x40] sm:$0xf0] %v503_v13  ;;  %v468_v14 = vpop.permute.xlu1 %467  ;;  %v466_v15 = vpop.permute.xlu0 %465 }
  0x9b   : > { %v470_v16 = vsel %vm469_vm10, %v466_v15, %v468_v14  ;;  %v988_v17 = vld [vmem:[#allocation2 + $0x10] sm:$0xff] }
  0x9c   : > { %v476_v18 = vrot.slane %v470_v16, 4  ;;  %1045 = vmatprep.subr.mxu0 %v988_v17 }
  0x9e   : > { %482 = vst [vmem:[#allocation2 + $0x50] sm:$0xf0] %v476_v18  ;;  %v427_v19 = vpop.permute.xlu1 %426  ;;  %v463_v20 = vpop.permute.xlu0 %462 }
  0x9f   : > { %v471_v21 = vsel %vm469_vm10, %v468_v14, %v463_v20  ;;  %v473_v22 = vsel %vm469_vm10, %v463_v20, %v466_v15  ;;  %v987_v23 = vld [vmem:[#allocation2 + $0x20] sm:$0xff]  ;;  %v989_v24 = vld [vmem:[#allocation2 + $0x38] sm:$0xff] }
  0xa0   : > { %v475_v25 = vrot.slane %v473_v22, 4  ;;  %v477_v26 = vrot.slane %v471_v21, 4  ;;  %1046 = vmatpush1.msra.mxu0 %v987_v23  ;;  %1618 = vmatprep.subr.mxu1 %v989_v24 }
  0xa1   : > { %1047 = vmatprep.subr.mxu0 %v985_v27  ;;  %1619 = vmatpush3.msra.mxu1 %v989_v24  ;;  %v984_v28 = vld [vmem:[#allocation2 + $0x8] sm:$0xff]  ;;  %v986_v29 = vld [vmem:[#allocation2 + $0x40] sm:$0xff] }
  0xa2   : > { %481 = vst [vmem:[#allocation2 + $0x18] sm:$0xf0] %v475_v25  ;;  %483 = vst [vmem:[#allocation2 + $0x68] sm:$0xf0] %v477_v26  ;;  %v449_v30 = vpop.permute.xlu1 %448  ;;  %v429_v31 = vpop.permute.xlu0 %428  ;;  %1048 = vmatpush1.msra.mxu0 %v984_v28  ;;  %1620 = vmatprep.subr.mxu1 %v986_v29 }
  0xa3   : > { %v431_v33 = vsel %vm430_vm11, %v427_v19, %v429_v31  ;;  %1621 = vmatpush3.msra.mxu1 %v986_v29 }
  0xa4   : > { %v437_v34 = vrot.slane %v431_v33, 4 }
  0xa6   : > { %443 = vst [vmem:[#allocation2] sm:$0xf0] %v437_v34  ;;  %v424_v35 = vpop.permute.xlu1 %423  ;;  %v451_v36 = vpop.permute.xlu0 %450 }
  0xa7   : > { %v432_v37 = vsel %vm430_vm11, %v429_v31, %v424_v35  ;;  %v434_v38 = vsel %vm430_vm11, %v424_v35, %v427_v19  ;;  %v453_v39 = vsel %vm452_vm12, %v449_v30, %v451_v36 }
  0xa8   : > { %v436_v40 = vrot.slane %v434_v38, 4  ;;  %v438_v41 = vrot.slane %v432_v37, 4  ;;  %460 = vst [vmem:[#allocation2 + $0x50] sm:$0xf] %v453_v39 }
  0xaa   : > { %442 = vst [vmem:[#allocation2 + $0x30] sm:$0xf0] %v436_v40  ;;  %444 = vst [vmem:[#allocation2 + $0x58] sm:$0xf0] %v438_v41  ;;  %v410_v42 = vpop.permute.xlu1 %409  ;;  %v446_v43 = vpop.permute.xlu0 %445 }
  0xab   : > { %v454_v44 = vsel %vm452_vm12, %v451_v36, %v446_v43  ;;  %v458_v45 = vsel %vm452_vm12, %v446_v43, %v449_v30 }
  0xac   : > { %459 = vst [vmem:[#allocation2 + $0x18] sm:$0xf] %v458_v45  ;;  %461 = vst [vmem:[#allocation2 + $0x68] sm:$0xf] %v454_v44 }
  0xae   : > { %v405_v46 = vpop.permute.xlu1 %404  ;;  %v412_v47 = vpop.permute.xlu0 %411 }
  0xaf   : > { %v419_v48 = vsel %vm413_vm13, %v405_v46, %v410_v42  ;;  %v414_v49 = vsel %vm413_vm13, %v410_v42, %v412_v47  ;;  %v415_v50 = vsel %vm413_vm13, %v412_v47, %v405_v46  ;;  %v982_v51 = vld [vmem:[#allocation2 + $0x50] sm:$0xff] }
  0xb0   : > { %420 = vst [vmem:[#allocation2 + $0x30] sm:$0xf] %v419_v48  ;;  %421 = vst [vmem:[#allocation2] sm:$0xf] %v414_v49  ;;  %1049 = vmatprep.subr.mxu0 %v982_v51 }
  0xb1   : > { %422 = vst [vmem:[#allocation2 + $0x58] sm:$0xf] %v415_v50 }
  0xb3   : > { %v981_v52 = vld [vmem:[#allocation2 + $0x18] sm:$0xff]  ;;  %v983_v53 = vld [vmem:[#allocation2 + $0x68] sm:$0xff] }
  0xb4   : > { %1050 = vmatpush1.msra.mxu0 %v981_v52  ;;  %1622 = vmatprep.subr.mxu1 %v983_v53 }
  0xb5   : > { %1623 = vmatpush3.msra.mxu1 %v983_v53 }
  0xb7   : > { %v979_v55 = vld [vmem:[#allocation2] sm:$0xff]  ;;  %v978_v57 = vld [vmem:[#allocation2 + $0x30] sm:$0xff] }
  0xb8   : > { %v980_v56 = vld [vmem:[#allocation2 + $0x58] sm:$0xff]  ;;  %1051 = vmatprep.subr.mxu0 %v979_v55 }
  0xb9   : > { %1624 = vmatprep.subr.mxu1 %v980_v56  ;;  %1052 = vmatpush1.msra.mxu0 %v978_v57 }
  0xba   : > { %1625 = vmatpush3.msra.mxu1 %v980_v56  ;;  %1561 = vmatmul.mubr.msk.f32.vlgmr.msra.gmra.mxu0 %vm1005_vm5, %v1912_v32 }
  0xbb   : > { %1627 = vmatmul.mubr.msk.f32.vlgmr.msra.gmra.mxu1 %vm1005_vm5, %v977_v54  ;;  %1091 = vmatprep.mubr.f32.mxu0 %v1729_v6  ;;  %v1984_v3 = vpop.permute.xlu1 %622  ;;  %v603_v4 = vpop.permute.xlu0 %602 }
  0xbc   : > { %1629 = vmatprep.subr.mxu0 %v1729_v6  ;;  %1362 = vmatprep.mubr.f32.mxu1 %v1729_v6 }
  0xbe   : > { %1562 = vmatmul.mubr.msk.f32.gmra.mxu0 %vm1005_vm5, %v977_v54 }
  0xbf   : > { %1633 = vmatprep.mubr.msk.f32.mxu0 %vm1730_vm0, %v1729_v6  ;;  %v598_v12 = vpop.permute.xlu1 %597  ;;  %v1986_v13 = vpop.permute.xlu0 %612 }
  0xc3   : > { %v618_v20 = vpop.permute.xlu1 %617  ;;  %v608_v21 = vpop.permute.xlu0 %607 }
  0xd9   : > { %v1974_v59 = vpop.f32.mrf.mxu1 }
  0xda   : > { %v1972_v58 = vpop.f32.mrf.mxu0 }
  0xdb   : > { %v1592_v32 = vpop.f32.mrf.mxu1 }
  0xdc   : > { %v1976_v60 = vpop.f32.mrf.mxu0 }
  0xdd   : > { %v1980_v62 = vpop.f32.mrf.mxu1 }
  0xde   : > { %v1978_v61 = vpop.f32.mrf.mxu0 }
  0xdf   : > { %v1593_v0 = vpop.f32.mrf.mxu1 }
  0xe0   : > { %v1982_v63 = vpop.f32.mrf.mxu0 }
  0xe1   : > { %v819_v2 = vpop.f32.mrf.mxu1 }
  0xe2   : > { %v740_v1 = vpop.f32.mrf.mxu0  ;;  %v1990_v25 = vadd.f32 %v819_v2, %v598_v12 }
  0xe3   : > { %v1596_v7 = vpop.f32.mrf.mxu1  ;;  %v741_v24 = vadd.f32 %v740_v1, %v598_v12 }
  0xe4   : > { %v742_v5 = vpop.f32.mrf.mxu0 }
  0xe5   : > { %v822_v9 = vpop.f32.mrf.mxu1  ;;  %v743_v27 = vadd.f32 %v742_v5, %v598_v12 }
  0xe6   : > { %v744_v8 = vpop.f32.mrf.mxu0 }
  0xe7   : > { %v1597_v11 = vpop.f32.mrf.mxu1  ;;  %v745_v34 = vadd.f32 %v744_v8, %v603_v4 }
  0xe8   : > { %v746_v10 = vpop.f32.mrf.mxu0  ;;  %v823_v11 = vadd.f32 %v822_v9, %v603_v4 }
  0xe9   : > { %v827_v15 = vpop.f32.mrf.mxu1  ;;  %v747_v41 = vadd.f32 %v746_v10, %v603_v4 }
  0xea   : > { %v750_v14 = vpop.f32.mrf.mxu0  ;;  %v1998_v33 = vadd.f32 %v827_v15, %v608_v21 }
  0xeb   : > { %v1600_v17 = vpop.f32.mrf.mxu1  ;;  %v1996_v31 = vadd.f32 %v750_v14, %v608_v21 }
  0xec   : > { %v752_v16 = vpop.f32.mrf.mxu0 }
  0xed   : > { %v1988_v19 = vpop.f32.mrf.mxu1  ;;  %v2005_v40 = vadd.f32 %v752_v16, %v608_v21 }
  0xee   : > { %v754_v18 = vpop.f32.mrf.mxu0 }
  0xef   : > { %v1601_v23 = vpop.f32.mrf.mxu1  ;;  %v755_v42 = vadd.f32 %v754_v18, %v1986_v13 }
  0xf0   : > { %v756_v22 = vpop.f32.mrf.mxu0 }
  0xf1   : > { %v835_v28 = vpop.f32.mrf.mxu1  ;;  %v757_v49 = vadd.f32 %v756_v22, %v1986_v13 }
  0xf2   : > { %v760_v26 = vpop.f32.mrf.mxu0  ;;  %v1994_v30 = vadd.f32 %v835_v28, %v618_v20 }
  0xf3   : > { %v1992_v29 = vadd.f32 %v760_v26, %v618_v20  ;;  %v1604_v36 = vpop.f32.mrf.mxu1 }
  0xf4   : > { %v762_v35 = vpop.f32.mrf.mxu0  ;;  %v1175_v39 = vmax.f32 %v1990_v25, %v1994_v30 }
  0xf5   : > { %v2000_v37 = vadd.f32 %v762_v35, %v618_v20  ;;  %v1173_v38 = vmax.f32 %v741_v24, %v1992_v29  ;;  %v838_v44 = vpop.f32.mrf.mxu1  ;;  %v831_v35 = vadd.f32 %v1988_v19, %v1986_v13  ;;  %v2043_v19 = vpop.permute.xlu0 %1002 }
  0xf6   : > { %v764_v43 = vpop.f32.mrf.mxu0  ;;  %v2012_v48 = vmax.f32 %v1175_v39, %v1998_v33  ;;  %v839_v23 = vadd.f32 %v838_v44, %v1984_v3 }
  0xf7   : > { %v765_v45 = vadd.f32 %v764_v43, %v1984_v3  ;;  %v1174_v46 = vmax.f32 %v743_v27, %v2000_v37  ;;  %v1179_v47 = vmax.f32 %v1173_v38, %v1996_v31  ;;  %v1605_v51 = vpop.f32.mrf.mxu1 }
  0xf8   : > { %v766_v50 = vpop.f32.mrf.mxu0  ;;  %v1187_v56 = vsub.f32 %v1990_v25, %v2012_v48  ;;  %v1205_v32 = vsub.f32 %v1994_v30, %v2012_v48  ;;  %v1223_v30 = vsub.f32 %v1998_v33, %v2012_v48 }
  0xf9   : > { %v1176_v52 = vmax.f32 %v745_v34, %v765_v45  ;;  %v767_v53 = vadd.f32 %v766_v50, %v1984_v3  ;;  %v2017_v54 = vmax.f32 %v1174_v46, %v2005_v40  ;;  %v1185_v55 = vsub.f32 %v741_v24, %v1179_v47  ;;  %v2027_v2 = vpop.f32.mrf.mxu1 }
  0xfa   : > { %v1203_v57 = vsub.f32 %v1992_v29, %v1179_v47  ;;  %v1221_v0 = vsub.f32 %v1996_v31, %v1179_v47  ;;  %v2025_v1 = vpop.f32.mrf.mxu0  ;;  %v1195_v39 = vmul.f32 1.442695, %v1187_v56 }
  0xfb   : > { %v1182_v5 = vmax.f32 %v1176_v52, %v755_v42  ;;  %v1177_v7 = vmax.f32 %v747_v41, %v767_v53  ;;  %v1186_v8 = vsub.f32 %v743_v27, %v2017_v54  ;;  %v1191_v10 = vmul.f32 1.442695, %v1185_v55  ;;  %v1608_v15 = vpop.f32.mrf.mxu1 }
  0xfc   : > { %v1204_v12 = vsub.f32 %v2000_v37, %v2017_v54  ;;  %v2032_v14 = vpop.f32.mrf.mxu0  ;;  %v1222_v22 = vsub.f32 %v2005_v40, %v2017_v54  ;;  %v1178_v40 = vmax.f32 %v823_v11, %v839_v23  ;;  %v1227_v13 = vmul.f32 1.442695, %v1221_v0 }
  0xfd   : > { %v1188_v16 = vsub.f32 %v745_v34, %v1182_v5  ;;  %v1206_v17 = vsub.f32 %v765_v45, %v1182_v5  ;;  %v1224_v18 = vsub.f32 %v755_v42, %v1182_v5  ;;  %v1183_v20 = vmax.f32 %v1177_v7, %v757_v49  ;;  %v846_v25 = vpop.f32.mrf.mxu1  ;;  %v2041_v42 = vpop.permute.xlu1 %862 }
  0xfe   : > { %1671 = vpow2.f32 %v1191_v10  ;;  %v1193_v21 = vmul.f32 1.442695, %v1186_v8  ;;  %v774_v24 = vpop.f32.mrf.mxu0  ;;  %v1211_v33 = vmul.f32 1.442695, %v1204_v12  ;;  %v1184_v44 = vmax.f32 %v1178_v40, %v831_v35 }
  0xff   : > { %v1197_v4 = vmul.f32 1.442695, %v1188_v16  ;;  %v1215_v9 = vmul.f32 1.442695, %v1206_v17  ;;  %v1233_v26 = vmul.f32 1.442695, %v1224_v18  ;;  %v1189_v27 = vsub.f32 %v747_v41, %v1183_v20  ;;  %v1609_v34 = vpop.f32.mrf.mxu1 }
 0x100   : > { %v1207_v28 = vsub.f32 %v767_v53, %v1183_v20  ;;  %v1225_v29 = vsub.f32 %v757_v49, %v1183_v20  ;;  %1673 = vpow2.f32 %v1193_v21  ;;  %v775_v31 = vpop.f32.mrf.mxu0  ;;  %v1209_v41 = vmul.f32 1.442695, %v1203_v57 }
 0x101   : > { %1675 = vpow2.f32 %v1197_v4  ;;  %v1199_v36 = vmul.f32 1.442695, %v1189_v27  ;;  %v969_v38 = vpop.f32.mrf.mxu1  ;;  %v1213_v45 = vmul.f32 1.442695, %v1205_v32  ;;  %v1190_v47 = vsub.f32 %v823_v11, %v1184_v44  ;;  %v593_v54 = vpop.permute.xlu1 %592 }
 0x102   : > { %1677 = vpow2.f32 %v1215_v9  ;;  %v1217_v3 = vmul.f32 1.442695, %v1207_v28  ;;  %v1235_v37 = vmul.f32 1.442695, %v1225_v29  ;;  %v1208_v48 = vsub.f32 %v839_v23, %v1184_v44  ;;  %v858_v32 = vpop.permute.xlu0 %857 }
 0x103   : > { %1679 = vpow2.f32 %v1233_v26  ;;  %v1614_v43 = vpop.f32.mrf.mxu1  ;;  %v1226_v49 = vsub.f32 %v831_v35, %v1184_v44  ;;  %v1229_v50 = vmul.f32 1.442695, %v1222_v22  ;;  %v1231_v52 = vmul.f32 1.442695, %v1223_v30 }
 0x104   : > { %1681 = vpow2.f32 %v1199_v36  ;;  %v1201_v53 = vmul.f32 1.442695, %v1190_v47  ;;  %v1219_v56 = vmul.f32 1.442695, %v1208_v48  ;;  %v735_v5 = vadd.f32 %v1978_v61, %v593_v54 }
 0x105   : > { %1683 = vpow2.f32 %v1217_v3  ;;  %v972_v46 = vpop.f32.mrf.mxu1  ;;  %v1237_v57 = vmul.f32 1.442695, %v1226_v49  ;;  %v737_v12 = vadd.f32 %v1982_v63, %v593_v54  ;;  %v970_v17 = vadd.f32 %v969_v38, %v858_v32  ;;  %v926_v49 = vpop.f32.mrf.mxu0 }
 0x106   : > { %1685 = vpow2.f32 %v1235_v37  ;;  %v588_v20 = vpop.permute.xlu0 %587  ;;  %v973_v36 = vadd.f32 %v972_v46, %v2041_v42 }
 0x107   : > { %1687 = vpow2.f32 %v1195_v39  ;;  %v1615_v51 = vpop.f32.mrf.mxu1  ;;  %v731_v4 = vadd.f32 %v1972_v58, %v588_v20  ;;  %v733_v28 = vadd.f32 %v1976_v60, %v588_v20  ;;  %v812_v30 = vadd.f32 %v1974_v59, %v588_v20 }
 0x108   : > { %1689 = vpow2.f32 %v1209_v41  ;;  %v815_v39 = vadd.f32 %v1980_v62, %v593_v54  ;;  %v927_v51 = vadd.f32 %v926_v49, %v858_v32 }
 0x109   : > { %1691 = vpow2.f32 %v1211_v33 }
 0x10a   : > { %1693 = vpow2.f32 %v1213_v45 }
 0x10b   : > { %v2045_v55 = vpop.eup %1671  ;;  %1695 = vpow2.f32 %v1227_v13 }
 0x10c   : > { %1697 = vpow2.f32 %v1229_v50  ;;  %v928_v50 = vpop.f32.mrf.mxu0 }
 0x10d   : > { %v2047_v0 = vpop.eup %1673  ;;  %1699 = vpow2.f32 %v1231_v52  ;;  %v998_v52 = vpop.permute.xlu1 %997 }
 0x10e   : > { %v2050_v7 = vpop.eup %1675  ;;  %1701 = vpow2.f32 %v1201_v53  ;;  %v930_v46 = vpop.f32.mrf.mxu0  ;;  %v929_v53 = vadd.f32 %v928_v50, %v858_v32 }
 0x10f   : > { %v2052_v8 = vpop.eup %1677  ;;  %1703 = vpow2.f32 %v1219_v56 }
 0x110   : > { %v1680_v10 = vpop.eup %1679  ;;  %v1242_v11 = vadd.f32 %v2052_v8, %v2050_v7  ;;  %1705 = vpow2.f32 %v1237_v57  ;;  %v932_v62 = vpop.f32.mrf.mxu0 }
 0x111   : > { %v2057_v15 = vpop.eup %1681  ;;  %v2059_v16 = vmul.f32 %v1680_v10, %v735_v5 }
 0x112   : > { %v2061_v18 = vpop.eup %1683  ;;  %v1248_v61 = vadd.f32 %v1680_v10, %v1242_v11  ;;  %v1257_v10 = vmul.f32 %v2045_v55, %v927_v51 }
 0x113   : > { %v1686_v21 = vpop.eup %1685  ;;  %v1243_v22 = vadd.f32 %v2061_v18, %v2057_v15 }
 0x114   : > { %v1688_v23 = vpop.eup %1687  ;;  %v2065_v24 = vmul.f32 %v1686_v21, %v737_v12 }
 0x115   : > { %v1690_v25 = vpop.eup %1689  ;;  %v2068_v63 = vmul.f32 %v1688_v23, %v970_v17  ;;  %v1249_v9 = vadd.f32 %v1686_v21, %v1243_v22 }
 0x116   : > { %v1692_v26 = vpop.eup %1691  ;;  %v1239_v27 = vadd.f32 %v1690_v25, %v2045_v55 }
 0x117   : > { %v1694_v29 = vpop.eup %1693  ;;  %v1240_v31 = vadd.f32 %v1692_v26, %v2047_v0 }
 0x118   : > { %v1696_v34 = vpop.eup %1695  ;;  %v1241_v35 = vadd.f32 %v1694_v29, %v1688_v23  ;;  %v1258_v23 = vmul.f32 %v2047_v0, %v929_v53 }
 0x119   : > { %v1698_v3 = vpop.eup %1697  ;;  %v1245_v37 = vadd.f32 %v1696_v34, %v1239_v27  ;;  %v1275_v58 = vmul.f32 %v1696_v34, %v731_v4  ;;  %v931_v4 = vadd.f32 %v930_v46, %v2041_v42 }
 0x11a   : > { %v1700_v38 = vpop.eup %1699  ;;  %v1276_v40 = vmul.f32 %v1698_v3, %v733_v28  ;;  %v1246_v41 = vadd.f32 %v1698_v3, %v1240_v31  ;;  %v933_v31 = vadd.f32 %v932_v62, %v2041_v42 }
 0x11b   : > { %v1702_v43 = vpop.eup %1701  ;;  %v1247_v33 = vadd.f32 %v1700_v38, %v1241_v35  ;;  %v1277_v60 = vmul.f32 %v1700_v38, %v812_v30  ;;  %1707 = vrcp.f32 %v1245_v37  ;;  %v1260_v0 = vmul.f32 %v2050_v7, %v931_v4  ;;  %v1293_v7 = vld [vmem:[%s2115_s9] sm:$0xf] }
 0x11c   : > { %v1704_v44 = vpop.eup %1703  ;;  %v1262_v45 = vmul.f32 %v1702_v43, %v973_v36 }
 0x11d   : > { %v1706_v59 = vpop.eup %1705  ;;  %v1244_v13 = vadd.f32 %v1704_v44, %v1702_v43 }
 0x11e   : > { %v1280_v47 = vmul.f32 %v1706_v59, %v815_v39 }
 0x11f   : > { %v1250_v48 = vadd.f32 %v1706_v59, %v1244_v13 }
 0x121   : > { %1709 = vrcp.f32 %v1250_v48 }
 0x122   : > { %1711 = vrcp.f32 %v1246_v41 }
 0x123   : > { %1713 = vrcp.f32 %v1247_v33 }
 0x124   : > { %1715 = vrcp.f32 %v1248_v61 }
 0x125   : > { %1717 = vrcp.f32 %v1249_v9 }
 0x128   : > { %v1708_v35 = vpop.eup %1707 }
 0x12e   : > { %v1710_v37 = vpop.eup %1709 }
 0x17a   : > { %v1087_v54 = vpop.f32.mrf.mxu0 }
 0x17b   : > { %v1628_v56 = vpop.f32.mrf.mxu1  ;;  %v1088_v57 = vadd.f32 %v1087_v54, %v998_v52 }
 0x17c   : > { %v1170_v5 = vadd.f32 %v1628_v56, %v2043_v19  ;;  %v1089_v11 = vpop.f32.mrf.mxu0 }
 0x17d   : > { %v1164_v12 = vpop.f32.mrf.mxu1  ;;  %v1263_v17 = vmul.f32 %v1690_v25, %v1088_v57  ;;  %v1090_v21 = vadd.f32 %v1089_v11, %v998_v52 }
 0x17e   : > { %v1268_v20 = vmul.f32 %v1704_v44, %v1170_v5  ;;  %v1165_v22 = vadd.f32 %v1164_v12, %v998_v52  ;;  %v1093_v61 = vpop.f32.mrf.mxu0  ;;  %v1261_v44 = vmul.f32 %v2057_v15, %v933_v31 }
 0x17f   : > { %v1269_v32 = vadd.f32 %v1263_v17, %v1257_v10  ;;  %v1264_v28 = vmul.f32 %v1692_v26, %v1090_v21  ;;  %v1094_v55 = vadd.f32 %v1093_v61, %v2043_v19  ;;  %v1712_v26 = vpop.eup %1711 }
 0x180   : > { %v1274_v27 = vadd.f32 %v1268_v20, %v1262_v45  ;;  %v1265_v30 = vmul.f32 %v1694_v29, %v1165_v22  ;;  %v1095_v34 = vpop.f32.mrf.mxu0  ;;  %v1714_v33 = vpop.eup %1713 }
 0x181   : > { %v1281_v9 = vadd.f32 %v1275_v58, %v1269_v32  ;;  %v1270_v36 = vadd.f32 %v1264_v28, %v1258_v23  ;;  %v1266_v38 = vmul.f32 %v2052_v8, %v1094_v55  ;;  %v1096_v39 = vadd.f32 %v1095_v34, %v2043_v19 }
 0x182   : > { %v1286_v25 = vadd.f32 %v1280_v47, %v1274_v27  ;;  %v1271_v3 = vadd.f32 %v1265_v30, %v2068_v63 }
 0x183   : > { %v1282_v42 = vadd.f32 %v1276_v40, %v1270_v36  ;;  %v1287_v43 = vmul.f32 %v1708_v35, %v1281_v9  ;;  %v1272_v58 = vadd.f32 %v1266_v38, %v1260_v0  ;;  %v1267_v45 = vmul.f32 %v2061_v18, %v1096_v39  ;;  %v1716_v40 = vpop.eup %1715 }
 0x184   : > { %v1283_v29 = vadd.f32 %v1277_v60, %v1271_v3  ;;  %v1292_v41 = vmul.f32 %v1710_v37, %v1286_v25  ;;  %v1718_v59 = vpop.eup %1717 }
 0x185   : > { %v1288_v8 = vmul.f32 %v1712_v26, %v1282_v42  ;;  %v1284_v19 = vadd.f32 %v2059_v16, %v1272_v58  ;;  %v1273_v60 = vadd.f32 %v1267_v45, %v1261_v44  ;;  %v628_v16 = vpop.permute.xlu1 %627 }
 0x186   : > { %1630 = vmatpush3.msra.mxu0 %v1292_v41  ;;  %v1289_v63 = vmul.f32 %v1714_v33, %v1283_v29  ;;  %v844_v47 = vadd.f32 %v2027_v2, %v628_v16  ;;  %v771_v50 = vadd.f32 %v2025_v1, %v628_v16  ;;  %v773_v51 = vadd.f32 %v2032_v14, %v628_v16 }
 0x187   : > { %1631 = vmatprep.subr.mxu0 %v1729_v6  ;;  %v1285_v15 = vadd.f32 %v2065_v24, %v1273_v60  ;;  %v1290_v18 = vmul.f32 %v1716_v40, %v1284_v19 }
 0x188   : > { %1632 = vmatpush3.msra.mxu0 %v1289_v63 }
 0x189   : > { %1634 = vmatmul.mubr.msk.f32.vlgmr.msra.gmra.mxu0 %vm1294_vm14, %v1293_v7  ;;  %v1291_v13 = vmul.f32 %v1718_v59, %v1285_v15 }
 0x18b   : > { %1326 = vmatprep.subr.mxu1 %v1291_v13 }
 0x18c   : > { %1327 = vmatpush1.msra.mxu1 %v1290_v18 }
 0x18d   : > { %1328 = vmatprep.subr.mxu1 %v1288_v8 }
 0x18e   : > { %1329 = vmatpush1.msra.mxu1 %v1287_v43 }
 0x18f   : > { %1566 = vmatmul.mubr.msk.f32.vlgmr.msra.gmra.mxu1 %vm1294_vm14, %v1293_v7 }
 0x249   : > { %v1435_v6 = vpop.f32.mrf.mxu0 }
 0x24a   : > { %v1436_v48 = vadd.f32 %v1435_v6, %v844_v47 }
 0x24b   : > { %v1635_v49 = vpop.f32.mrf.mxu0 }
 0x24c   : > { %v1441_v24 = vmax.f32 %v1436_v48, 0.0 }
 0x24e   : > { %1447 = vst [vmem:[%s399_s26 + $0x8] sm:$0xf] %v1441_v24 }
 0x24f   : > { %v1364_v46 = vpop.f32.mrf.mxu1 }
 0x250   : > { %v1365_v62 = vadd.f32 %v1364_v46, %v771_v50 }
 0x251   : > { %v1366_v52 = vpop.f32.mrf.mxu1 }
 0x252   : > { %v1367_v53 = vadd.f32 %v1366_v52, %v773_v51  ;;  %v1439_v54 = vmax.f32 %v1365_v62, 0.0 }
 0x254   : > { %v1440_v56 = vmax.f32 %v1367_v53, 0.0 }
 0x256   : > { %v1444_v2 = vcombine.low %v1439_v54, %v1440_v56 }
 0x258   : > { %1446 = vst [vmem:[%s399_s26] sm:$0xff] %v1444_v2 }
 0x259 PF: > { %s20_s13 = sadd.s32 1, %s1725_s13  }
 0x25a   : > { %p17_p4 = scmp.ge.s32.totalorder %s20_s13, 4  }
 0x25c   :  { %19 = sbr.rel (!%p17_p4) target bundleno = 1 (0x1), region = 96 }

</bundles_post_ra>
